<compile_context>
chip_gen: v7x
topology: tpu7x:2x2x1
jax: 0.10.0
libtpu: 0.0.40
codegen_flags: <defaults>
</compile_context>

<pallas_src>
import jax
import jax.numpy as jnp
from jax.experimental import pallas as pl
from jax.experimental.pallas import tpu as pltpu

BN_EPS = 1e-5


# ----------------------------------------------------------------------------
# Single fused kernel: three MXU matmuls with add+ReLU VPU epilogues.
# Everything (input, weights, activations) is resident in VMEM.
# ----------------------------------------------------------------------------
def mlp_kernel(x_ref, w1_ref, w2_ref, w3_ref, b_ref, o_ref):
    # x_ref:  (N, 784) f32
    # w1_ref: (F, 784) bf16  -- PyTorch orientation (lane-dense), BN1 scale folded in
    # w2_ref: (F, F)   bf16  -- BN2 scale folded into output columns
    # w3_ref: (F, C)   bf16
    # b_ref:  (8, 128) f32   -- row 0: fused fc1-bias+BN1 shift, row 1: fc2+BN2, row 2: fc3 bias
    # o_ref:  (N, C)   f32 logits
    F = w2_ref.shape[1]
    C = o_ref.shape[1]

    x = x_ref[...].astype(jnp.bfloat16)

    # fc1 (+ folded BN1 scale): contract x dim 1 with w1 dim 1 ("NT" matmul),
    # keeping w1 lane-dense so its DMA moves only the useful bytes.
    h = jax.lax.dot_general(
        x, w1_ref[...], (((1,), (1,)), ((), ())),
        preferred_element_type=jnp.float32)
    h = jnp.maximum(h + b_ref[0:1, :F], 0.0).astype(jnp.bfloat16)   # BN1 shift + ReLU

    h = jnp.dot(h, w2_ref[...], preferred_element_type=jnp.float32)
    h = jnp.maximum(h + b_ref[1:2, :F], 0.0).astype(jnp.bfloat16)   # BN2 shift + ReLU

    out = jnp.dot(h, w3_ref[...], preferred_element_type=jnp.float32)
    o_ref[...] = (out + b_ref[2:3, :C]).astype(o_ref.dtype)


def fused_forward_call(x_flat, kp):
    N = x_flat.shape[0]
    C = kp["w3"].shape[1]
    vmem = pl.BlockSpec(memory_space=pltpu.MemorySpace.VMEM)
    return pl.pallas_call(
        mlp_kernel,
        out_shape=jax.ShapeDtypeStruct((N, C), jnp.float32),
        in_specs=[vmem, vmem, vmem, vmem, vmem],
        out_specs=vmem,
    )(x_flat, kp["w1"], kp["w2"], kp["w3"], kp["biases"])


# ----------------------------------------------------------------------------
# Parameters: PyTorch-shaped weights; BN (inference mode) folded into weights
# and per-feature shifts ONCE, producing kernel-ready bf16 weights + one bias tile.
# ----------------------------------------------------------------------------
def make_raw_params(key, input_size, n_features, n_class):
    ks = jax.random.split(key, 14)
    p = {}
    # nn.Linear weights are (out, in); biases (out,)
    p["fc1_w"] = 0.05 * jax.random.normal(ks[0], (n_features, input_size), jnp.float32)
    p["fc1_b"] = 0.05 * jax.random.normal(ks[1], (n_features,), jnp.float32)
    p["fc2_w"] = 0.05 * jax.random.normal(ks[2], (n_features, n_features), jnp.float32)
    p["fc2_b"] = 0.05 * jax.random.normal(ks[3], (n_features,), jnp.float32)
    p["fc3_w"] = 0.05 * jax.random.normal(ks[4], (n_class, n_features), jnp.float32)
    p["fc3_b"] = 0.05 * jax.random.normal(ks[5], (n_class,), jnp.float32)
    # BatchNorm1d (inference-mode running stats + affine)
    for i, base in ((1, 6), (2, 10)):
        p[f"bn{i}_g"] = 1.0 + 0.1 * jax.random.normal(ks[base], (n_features,), jnp.float32)
        p[f"bn{i}_b"] = 0.1 * jax.random.normal(ks[base + 1], (n_features,), jnp.float32)
        p[f"bn{i}_m"] = 0.1 * jax.random.normal(ks[base + 2], (n_features,), jnp.float32)
        p[f"bn{i}_v"] = 0.5 + jax.random.uniform(ks[base + 3], (n_features,), jnp.float32)
    return p


def make_kernel_params(raw, n_features, n_class):
    # BN(Wx + b) == (x @ (W*scale).T) + shift  with
    #   scale = gamma / sqrt(var + eps),  shift = (b - mean)*scale + beta
    s1 = raw["bn1_g"] / jnp.sqrt(raw["bn1_v"] + BN_EPS)
    b1 = (raw["fc1_b"] - raw["bn1_m"]) * s1 + raw["bn1_b"]
    s2 = raw["bn2_g"] / jnp.sqrt(raw["bn2_v"] + BN_EPS)
    b2 = (raw["fc2_b"] - raw["bn2_m"]) * s2 + raw["bn2_b"]

    kp = {}
    # w1 kept in PyTorch (F, 784) lane-dense orientation; BN1 scale is per row here.
    kp["w1"] = (raw["fc1_w"] * s1[:, None]).astype(jnp.bfloat16)        # (F, 784)
    # w2 used as (F_in, F_out); BN2 scale is per output column.
    kp["w2"] = (jnp.transpose(raw["fc2_w"]) * s2[None, :]).astype(jnp.bfloat16)  # (F, F)
    kp["w3"] = jnp.transpose(raw["fc3_w"]).astype(jnp.bfloat16)          # (F, C)

    # Pack all shift/bias vectors into a single (8, 128) f32 VMEM tile.
    biases = jnp.zeros((8, 128), jnp.float32)
    biases = biases.at[0, :n_features].set(b1)
    biases = biases.at[1, :n_features].set(b2)
    biases = biases.at[2, :n_class].set(raw["fc3_b"])
    kp["biases"] = biases
    return kp


@jax.jit
def base_model_mnist_forward(x, kernel_params):
    # x.view(-1, 28*28)
    x_flat = x.reshape(-1, 28 * 28).astype(jnp.float32)
    return fused_forward_call(x_flat, kernel_params)


def reference_forward(x, kp, n_features, n_class):
    # Pure-JAX reference replicating the kernel's bf16-weight / f32-accumulate math.
    h = x.reshape(-1, 28 * 28).astype(jnp.bfloat16)
    h = jax.lax.dot_general(h, kp["w1"], (((1,), (1,)), ((), ())),
                            preferred_element_type=jnp.float32)
    h = jnp.maximum(h + kp["biases"][0:1, :n_features], 0.0).astype(jnp.bfloat16)
    h = jnp.dot(h, kp["w2"], preferred_element_type=jnp.float32)
    h = jnp.maximum(h + kp["biases"][1:2, :n_features], 0.0).astype(jnp.bfloat16)
    out = jnp.dot(h, kp["w3"], preferred_element_type=jnp.float32)
    return out + kp["biases"][2:3, :n_class]


if __name__ == "__main__":
    # module args: input_size = 28*28 (forward hard-codes the view),
    #              n_features = 32, n_class = 10; batch = 2 MNIST-like images.
    N, C_IN, HW = 2, 1, 28
    IN_SIZE, N_FEAT, N_CLASS = 28 * 28, 32, 10

    key = jax.random.PRNGKey(0)
    kx, kp_key = jax.random.split(key)
    x = jax.random.normal(kx, (N, C_IN, HW, HW), jnp.float32)   # NCHW like PyTorch

    raw = make_raw_params(kp_key, IN_SIZE, N_FEAT, N_CLASS)
    kparams = jax.tree_util.tree_map(
        jax.block_until_ready, make_kernel_params(raw, N_FEAT, N_CLASS))

    logits = jax.block_until_ready(base_model_mnist_forward(x, kparams))

    assert logits.shape == (N, N_CLASS)
    assert bool(jnp.all(jnp.isfinite(logits)))

    ref = reference_forward(x, kparams, N_FEAT, N_CLASS)
    assert bool(jnp.allclose(logits, ref, rtol=2e-3, atol=2e-3)), (
        float(jnp.max(jnp.abs(logits - ref))))

    print("KERNEL_OK")
</pallas_src>

<mosaic_0001>
module attributes {stable_mosaic.version = 11 : i64} {
  func.func @mlp_kernel(%arg0: memref<2x784xf32, #tpu.memory_space<vmem>>, %arg1: memref<32x784xbf16, #tpu.memory_space<vmem>>, %arg2: memref<32x32xbf16, #tpu.memory_space<vmem>>, %arg3: memref<32x10xbf16, #tpu.memory_space<vmem>>, %arg4: memref<8x128xf32, #tpu.memory_space<vmem>>, %arg5: memref<2x10xf32, #tpu.memory_space<vmem>>) attributes {dimension_semantics = [], scalar_prefetch = 0 : i64, scratch_operands = 0 : i64, tpu.core_type = #tpu.core_type<tc>} {
    %c0 = arith.constant 0 : index
    %c0_0 = arith.constant 0 : index
    %0 = vector.load %arg0[%c0, %c0_0] : memref<2x784xf32, #tpu.memory_space<vmem>>, vector<2x784xf32>
    %1 = arith.truncf %0 : vector<2x784xf32> to vector<2x784xbf16>
    %c0_1 = arith.constant 0 : index
    %c0_2 = arith.constant 0 : index
    %2 = vector.load %arg1[%c0_1, %c0_2] : memref<32x784xbf16, #tpu.memory_space<vmem>>, vector<32x784xbf16>
    %cst = arith.constant dense<0.000000e+00> : vector<2x32xf32>
    %3 = tpu.matmul %1, %2, %cst {dimension_numbers = #tpu.dot_dimension_numbers<[1], [1], [0], [0], [0, 0, 1, 0], [], []>} : vector<2x784xbf16>, vector<32x784xbf16>, vector<2x32xf32> -> vector<2x32xf32>
    %c0_3 = arith.constant 0 : index
    %c0_4 = arith.constant 0 : index
    %4 = vector.load %arg4[%c0_3, %c0_4] : memref<8x128xf32, #tpu.memory_space<vmem>>, vector<1x32xf32>
    %5 = vector.broadcast %4 : vector<1x32xf32> to vector<2x32xf32>
    %6 = arith.addf %3, %5 : vector<2x32xf32>
    %cst_5 = arith.constant 0.000000e+00 : f32
    %7 = vector.broadcast %cst_5 : f32 to vector<2x32xf32>
    %8 = arith.maximumf %6, %7 : vector<2x32xf32>
    %9 = arith.truncf %8 : vector<2x32xf32> to vector<2x32xbf16>
    %c0_6 = arith.constant 0 : index
    %c0_7 = arith.constant 0 : index
    %10 = vector.load %arg2[%c0_6, %c0_7] : memref<32x32xbf16, #tpu.memory_space<vmem>>, vector<32x32xbf16>
    %cst_8 = arith.constant dense<0.000000e+00> : vector<2x32xf32>
    %11 = tpu.matmul %9, %10, %cst_8 {dimension_numbers = #tpu.dot_dimension_numbers<[1], [0], [0], [1], [0, 0, 1, 1], [], []>} : vector<2x32xbf16>, vector<32x32xbf16>, vector<2x32xf32> -> vector<2x32xf32>
    %c1 = arith.constant 1 : index
    %c0_9 = arith.constant 0 : index
    %12 = vector.load %arg4[%c1, %c0_9] : memref<8x128xf32, #tpu.memory_space<vmem>>, vector<1x32xf32>
    %13 = vector.broadcast %12 : vector<1x32xf32> to vector<2x32xf32>
    %14 = arith.addf %11, %13 : vector<2x32xf32>
    %cst_10 = arith.constant 0.000000e+00 : f32
    %15 = vector.broadcast %cst_10 : f32 to vector<2x32xf32>
    %16 = arith.maximumf %14, %15 : vector<2x32xf32>
    %17 = arith.truncf %16 : vector<2x32xf32> to vector<2x32xbf16>
    %c0_11 = arith.constant 0 : index
    %c0_12 = arith.constant 0 : index
    %18 = vector.load %arg3[%c0_11, %c0_12] : memref<32x10xbf16, #tpu.memory_space<vmem>>, vector<32x10xbf16>
    %cst_13 = arith.constant dense<0.000000e+00> : vector<2x10xf32>
    %19 = tpu.matmul %17, %18, %cst_13 {dimension_numbers = #tpu.dot_dimension_numbers<[1], [0], [0], [1], [0, 0, 1, 1], [], []>} : vector<2x32xbf16>, vector<32x10xbf16>, vector<2x10xf32> -> vector<2x10xf32>
    %c2 = arith.constant 2 : index
    %c0_14 = arith.constant 0 : index
    %20 = vector.load %arg4[%c2, %c0_14] : memref<8x128xf32, #tpu.memory_space<vmem>>, vector<1x10xf32>
    %21 = vector.broadcast %20 : vector<1x10xf32> to vector<2x10xf32>
    %22 = arith.addf %19, %21 : vector<2x10xf32>
    %c0_15 = arith.constant 0 : index
    %c0_16 = arith.constant 0 : index
    %23 = vector.load %arg5[%c0_15, %c0_16] : memref<2x10xf32, #tpu.memory_space<vmem>>, vector<2x10xf32>
    tpu.vector_store %arg5[%c0_15, %c0_16], %22 {strides = array<i32>} : memref<2x10xf32, #tpu.memory_space<vmem>>, vector<2x10xf32>,
    return
  }
}

</mosaic_0001>

<bundles_post_ra>
// kernel: base_model_mnist_forward.1
= control target key start
LH: loop header
LB: loop body
LE: loop exit
PB: predicated region body
PF: predicated region fallthrough
CT: control target
= control target key end

     0   :  { %v30_v1 = vlaneseq  ;;  %v604_v3 = vmov 1983009808   ;;  %s724_s0 = inlined_call_operand.vmem [shape: f32[2,784], index: 0, kind: input, shape index: {}]   ;;  %s725_s1 = inlined_call_operand.vmem [shape: bf16[32,784], index: 1, kind: input, shape index: {}]   ;;  %s726_s2 = inlined_call_operand.vmem [shape: bf16[32,32], index: 2, kind: input, shape index: {}]   ;;  %s727_s3 = inlined_call_operand.vmem [shape: bf16[32,10], index: 3, kind: input, shape index: {}]   ;;  %s728_s4 = inlined_call_operand.vmem [shape: f32[8,128], index: 4, kind: input, shape index: {}]   ;;  %s729_s5 = inlined_call_operand.hbm [shape: f32[2,10], index: 5, kind: output, shape index: {}]  }
   0x1   :  { %v554_v0 = vld [vmem:[%s725_s1 + $0xc] ss:$28 sps:$4 sm:$0xff]   ;;  %v28_v4 = vunpack.c.l.s4 %v604_v3  ;;  %v557_v5 = vld [vmem:[%s725_s1 + $0x44] ss:$28 sps:$4 sm:$0xff]   ;;  %v563_v17 = vld [vmem:[%s725_s1 + $0x14] ss:$28 sps:$4 sm:$0xff]  }
   0x2   :  { %v556_v2 = vld [vmem:[%s725_s1 + $0x8] ss:$28 sps:$4 sm:$0xff]   ;;  %214 = vmatprep.subr.bf16.mxu0 %v554_v0  ;;  %v31_v7 = vshrl.u32 %v30_v1, 7  ;;  %v559_v10 = vld [vmem:[%s725_s1 + $0x40] ss:$28 sps:$4 sm:$0xff]  }
   0x3   :  { %v22_v6 = vld [vmem:[%s724_s0] sm:$0xff]  ;;  %215 = vmatpush1.bf16.xpose.msra.mxu0 %v556_v2  ;;  %v29_v9 = vunpack.c.0.s8 %v28_v4  ;;  %v23_v15 = vld [vmem:[%s724_s0 + $0x8] sm:$0x3f]  ;;  %v572_v20 = vld [vmem:[%s725_s1 + $0x3c] ss:$28 sps:$4 sm:$0xff]  }
   0x4   :  { %v26_v8 = vcombine.high %v22_v6, %v22_v6  ;;  %216 = vmatprep.subr.bf16.mxu0 %v557_v5  ;;  %v567_v12 = vld [vmem:[%s725_s1 + $0x4] ss:$28 sps:$4 sm:$0xff]   ;;  %v574_v25 = vld [vmem:[%s725_s1 + $0x38] ss:$28 sps:$4 sm:$0xff]  }
   0x5   :  { %v32_v11 = vsub.s32 %v29_v9, %v31_v7  ;;  %v569_v13 = vld [vmem:[%s725_s1] ss:$28 sps:$4 sm:$0xff]   ;;  %174 = vmatprep.subr.bf16.mxu1 %v567_v12 }
   0x6   :  { %175 = vmatpush1.bf16.xpose.msra.mxu1 %v569_v13 }
   0x7   :  { %v40_v14 = vrot.slane %v26_v8, %v32_v11  ;;  %v33_v16 = vrot.slane %v22_v6, %v32_v11  ;;  %v50_v18 = vrot.slane %v23_v15, %v32_v11  ;;  %176 = vmatprep.subr.bf16.mxu1 %v572_v20 }
   0x9   :  { %v42_v19 = vcombine.high %v40_v14, %v40_v14  ;;  %v41_v21 = vcombine.high %v33_v16, %v33_v16  ;;  %v58_v23 = vcombine.high %v50_v18, %v50_v18  ;;  %v68_v26 = vpack.c.bf16 %v40_v14, %v40_v14 }
   0xb   :  { %217 = vmatpush1.bf16.xpose.msra.mxu0 %v559_v10  ;;  %v69_v22 = vpack.c.bf16 %v42_v19, %v42_v19  ;;  %v67_v24 = vpack.c.bf16 %v41_v21, %v41_v21 }
   0xc   :  { %254 = vmatprep.subr.bf16.mxu0 %v563_v17 }
   0xd   :  { %246 = vmatprep.mubr.bf16.mxu0 %v69_v22  ;;  %206 = vmatprep.mubr.bf16.mxu1 %v67_v24 }
   0xe   :  { %10 = vsyncpa [#allocation3], 0  ;;  %v561_v27 = vld [vmem:[%s725_s1 + $0x10] ss:$28 sps:$4 sm:$0xff]   ;;  %v71_v28 = vpack.c.bf16 %v58_v23, %v58_v23  ;;  %177 = vmatpush1.bf16.xpose.msra.mxu1 %v574_v25  ;;  %v605_v30 = vmov 0.0   ;;  %v66_v31 = vpack.c.bf16 %v33_v16, %v33_v16  ;;  %vm606_vm0 = vmmov 0  }
   0xf   :  { %v566_v29 = vld [vmem:[%s725_s1 + $0x4c] ss:$28 sps:$4 sm:$0xff]   ;;  %524 = vmatprep.subr.bf16.mxu1 %v605_v30  ;;  %v571_v33 = vld [vmem:[%s725_s1 + $0x18] ss:$28 sps:$4 sm:$0xff]   ;;  %vm164_vm1 = vcmask 130048   ;;  %v70_v34 = vpack.c.bf16 %v50_v18, %v50_v18  ;;  %v43_v37 = vcombine.high %v23_v15, %v23_v15  ;;  %v576_v41 = vld [vmem:[%s726_s2] sm:$0xff]  }
  0x10   :  { %v564_v32 = vld [vmem:[%s725_s1 + $0x48] ss:$28 sps:$4 sm:$0xff]   ;;  %v169_v35 = vsel %vm164_vm1, %v571_v33, 0  ;;  %v575_v36 = vld [vmem:[%s725_s1 + $0x50] ss:$28 sps:$4 sm:$0xff]   ;;  %vm357_vm2 = vcmask 261120  }
  0x11   :  { %v172_v38 = vsel %vm164_vm1, %v575_v36, 0  ;;  %v57_v39 = vrot.slane %v43_v37, %v32_v11  ;;  %v577_v42 = vld [vmem:[%s726_s2 + $0x8] sm:$0xff]   ;;  %v483_v47 = vld [vmem:[%s728_s4] ss:$0 sm:$0xff]  ;;  %v499_v58 = vld [vmem:[%s728_s4 + $0x1] ss:$0 sm:$0xff] }
  0x12   :  { %247 = vmatmul.mubr.bf16.vlgmr.msra.gmra.mrb[0].mxu0 %v68_v26  ;;  %v578_v55 = vld [vmem:[%s727_s3] sm:$0xff]   ;;  %v579_v57 = vld [vmem:[%s727_s3 + $0x8] sm:$0xff]   ;;  %s607_s11 = smov [#allocation2]   ;;  %vm467_vm3 = vcmask 74752  }
  0x13   :  { %255 = vmatpush1.bf16.xpose.msra.mxu0 %v561_v27  ;;  %286 = vmatprep.mubr.bf16.mxu0 %v71_v28  ;;  %v72_v40 = vpack.c.bf16 %v57_v39, %v57_v39  ;;  %v503_v2 = vld [vmem:[%s728_s4 + $0x2] ss:$0 sm:$0xff]  ;;  %s475_s3 = sshll.u32 %s607_s11, 4  ;;  %s476_s3 = int_to_ptr.vmem [resolvable:$true] %s475_s3 }
  0x14   :  { %256 = vmatprep.subr.bf16.mxu0 %v566_v29  ;;  %s580_s12 = scalar_lea.vmem %s476_s3, 32  ;;  %p585_p1 = scmp.lt.s32.totalorder %s476_s3, %s476_s3 }
  0x15   :  { %207 = vmatmul.mubr.bf16.vlgmr.msra.gmra.mrb[0].mxu1 %v66_v31  ;;  %p581_p0 = scmp.ne.s32.totalorder %s476_s3, %s580_s12  ;;  %p586_p2 = scmp.lt.s32.totalorder %s580_s12, %s580_s12 }
  0x16   :  { %528 = vmatprep.mubr.msk.bf16.mxu1 %vm606_vm0, %v605_v30  ;;  %525 = vmatpush3.bf16.msra.mxu1 %v576_v41 }
  0x17   :  { %526 = vmatprep.subr.bf16.mxu1 %v605_v30  ;;  %p587_p3 = por %p586_p2, %p585_p1 }
  0x19   :  { %p588_p4 = pnand %p587_p3, %p581_p0 }
  0x1a   :  { %527 = vmatpush3.bf16.msra.mxu1 %v577_v42 }
  0x1b   :  { %257 = vmatpush1.bf16.xpose.msra.mxu0 %v564_v32  ;;  %532 = vmatprep.subr.bf16.mxu1 %v605_v30 }
  0x1c   :  { %516 = vmatprep.subr.bf16.mxu0 %v605_v30 }
  0x22   :  { %287 = vmatmul.mubr.bf16.vlgmr.msra.gmra.mrb[0].mxu0 %v70_v34 }
  0x23   :  { %517 = vmatpush3.bf16.xpose.msra.mxu0 %v169_v35  ;;  %520 = vmatprep.mubr.msk.bf16.mxu0 %vm606_vm0, %v605_v30 }
  0x24   :  { %518 = vmatprep.subr.bf16.mxu0 %v605_v30 }
  0x2b   :  { %519 = vmatpush3.bf16.xpose.msra.mxu0 %v172_v38 }
  0x32   :  { %521 = vmatmul.mubr.msk.bf16.vlgmr.msra.gmra.mrb[0].mxu0 %vm164_vm1, %v72_v40 }
  0xe8   :  { %v208_v43 = vpop.f32.mrb[0].mxu1 }
  0xe9   :  { %v210_v44 = vpop.f32.mrb[1].mxu1  ;;  %v209_v48 = vadd.f32 %v483_v47, %v208_v43 }
  0xea   :  { %v211_v45 = vpop.f32.mrb[2].mxu1 }
  0xeb   :  { %v212_v46 = vpop.f32.mrb[3].mxu1 }
 0x105   :  { %v328_v49 = vpop.f32.mrb[0].mxu0 }
 0x106   :  { %v541_v50 = vadd.f32 %v328_v49, %v209_v48  ;;  %v522_v51 = vpop.f32.mrb[1].mxu0 }
 0x107   :  { %v331_v52 = vpop.f32.mrb[2].mxu0 }
 0x108   :  { %v334_v53 = vmax.f32 %v541_v50, 0.0  ;;  %v523_v54 = vpop.f32.mrb[3].mxu0 }
 0x10a   :  { %v335_v56 = vpack.c.bf16 %v334_v53, %v334_v53 }
 0x10c   :  { %529 = vmatmul.mubr.msk.bf16.vlgmr.msra.gmra.mrb[4].mxu1 %vm357_vm2, %v335_v56 }
 0x10d   :  { %533 = vmatpush3.bf16.msra.mxu1 %v578_v55  ;;  %536 = vmatprep.mubr.msk.bf16.mxu1 %vm606_vm0, %v605_v30 }
 0x10e   :  { %534 = vmatprep.subr.bf16.mxu1 %v605_v30 }
 0x111   :  { %535 = vmatpush3.bf16.msra.mxu1 %v579_v57 }
 0x1df   :  { %v395_v59 = vpop.f32.mrb[4].mxu1 }
 0x1e0   :  { %v396_v60 = vadd.f32 %v499_v58, %v395_v59  ;;  %v530_v61 = vpop.f32.mrb[5].mxu1 }
 0x1e1   :  { %v398_v62 = vpop.f32.mrb[6].mxu1 }
 0x1e2   :  { %v401_v63 = vmax.f32 %v396_v60, 0.0  ;;  %v531_v0 = vpop.f32.mrb[7].mxu1 }
 0x1e4   :  { %v402_v1 = vpack.c.bf16 %v401_v63, %v401_v63 }
 0x1e6   :  { %537 = vmatmul.mubr.msk.bf16.vlgmr.msra.gmra.mrb[8].mxu1 %vm357_vm2, %v402_v1 }
 0x2b9   :  { %v461_v3 = vpop.f32.mrb[8].mxu1 }
 0x2ba   :  { %v462_v4 = vadd.f32 %v503_v2, %v461_v3  ;;  %v538_v5 = vpop.f32.mrb[9].mxu1 }
 0x2bb   :  { %v464_v6 = vpop.f32.mrb[10].mxu1 }
 0x2bc   :  { %v539_v7 = vpop.f32.mrb[11].mxu1  ;;  %468 = vst.msk [vmem:[#allocation2] sm:$0x3] %vm467_vm3, %v462_v4 }
 0x2bd   :  { %591 = shalt.err (!%p588_p4)
}
 0x2be   :  { %s592_s4 = scalar_lea.hbm %s729_s5, 32 }
 0x2bf   :  { %p593_p5 = scmp.ne.s32.totalorder %s729_s5, %s592_s4  ;;  %p596_p6 = scmp.lt.u32.totalorder %s592_s4, %s729_s5 }
 0x2c1   :  { %p598_p7 = pnand %p596_p6, %p593_p5 }
 0x2c3   :  { %601 = shalt.err (!%p598_p7)
}
 0x2c4   :  { %478 = dma.vmem_to_hbm [thread:$0]  %s476_s3, 32, %s729_s5, [#allocation3]  }
 0x2c5   :  { %602 = dma.done.wait [#allocation3], 32  }
 0x2c6   :  { %603 = vsyncadd [#allocation3], 4294967264 }
 0x2c7   :  { %482 = vsyncpa [#allocation3], 1 }

</bundles_post_ra>
